<compile_context>
chip_gen: v7x
topology: tpu7x:2x2x1
jax: 0.10.0
libtpu: 0.0.40
codegen_flags: <defaults>
</compile_context>

<pallas_src>
import functools

import jax
import jax.numpy as jnp
from jax.experimental import pallas as pl
from jax.experimental.pallas import tpu as pltpu


_TARGET_PIXEL_ROWS = 1024   # 512-1024 pixel-row tiles sit at ~85% of HBM roofline


# ----------------------------- Pallas kernel -------------------------------- #

def _upconv_kernel(x_ref, w_ref, b_ref, o_ref):
    """One row-tile of the up-conv-as-matmul.

    x_ref: (t_r, W, C_in)        input pixels, rows grouped by image row (n, h)
    w_ref: (C_in, 4*C_out)       weights, columns ordered (kh, kw, co)
    b_ref: (1, 4*C_out)          bias (f32), same column order
    o_ref: (t_r, 2, W, 2*C_out)  output block -> reshapes straight to NHWC later
    """
    t_r, w_dim, c_in = x_ref.shape
    k2 = o_ref.shape[-1]                         # 2*C_out, columns (kw, co)

    # (t_r, W) -> pixel rows.  Free relayout when W % 8 == 0; a VMEM-local copy
    # otherwise (accounted for in the VMEM budget).
    x2 = x_ref[...].reshape(t_r * w_dim, c_in)

    # Single fused MXU pass over all four (kh, kw) taps; f32 accumulation.
    acc = jnp.dot(x2, w_ref[...], preferred_element_type=jnp.float32)
    acc = acc + b_ref[...].astype(jnp.float32)   # broadcast (1, 4*C_out)
    acc = acc.reshape(t_r, w_dim, 2 * k2)

    # Static lane slices split the two kh halves (lane-aligned when C_out>=64).
    o_ref[:, 0, :, :] = acc[:, :, :k2].astype(o_ref.dtype)
    o_ref[:, 1, :, :] = acc[:, :, k2:].astype(o_ref.dtype)


# ----------------------------- tiling heuristics ---------------------------- #

def _vmem_capacity_bytes():
    try:
        info = pltpu.get_tpu_info()
        cap = int(getattr(info, "vmem_capacity_bytes", 0))
        if cap > 0:
            return cap
    except Exception:
        pass
    return 64 * 2**20            # conservative fallback (v7x per-TensorCore VMEM)


def _choose_row_tiling(R, W, C_in, C_out, in_itemsize, out_itemsize):
    """Pick (row tile in image rows, number of row tiles, vmem_limit_bytes)."""
    K4, K2 = 4 * C_out, 2 * C_out

    cap = _vmem_capacity_bytes()
    # v5e/v6e (128 MiB VMEM): large tiles keep the low-BW HBM pipeline full.
    # v7x (64 MiB per TC): stay well under the scoped limit, temporaries included.
    budget = 48 * 2**20 if cap >= 96 * 2**20 else 22 * 2**20

    def vmem_bytes(tr):
        p = tr * W
        x_db = 2 * p * C_in * in_itemsize              # double-buffered input
        w_db = 2 * C_in * K4 * in_itemsize             # grid-constant, counted 2x
        b_db = 2 * K4 * 4
        o_db = 2 * p * 2 * K2 * out_itemsize           # double-buffered output
        acc = p * K4 * 4                               # in-kernel f32 accumulator
        rshp = p * C_in * in_itemsize if (W % 8) else 0    # odd-W reshape copy
        return x_db + w_db + b_db + o_db + acc + rshp

    t_r = max(1, min(R, _TARGET_PIXEL_ROWS // max(W, 1)))
    while t_r > 1 and vmem_bytes(t_r) > budget:
        t_r = max(1, t_r // 2)
    # TODO(synk): no W-axis fallback -- for extreme (W, C_out) even t_r=1 may
    # exceed the VMEM limit (compile-time failure, never a wrong answer).

    n_tiles = pl.cdiv(R, t_r)
    if R >= 2:
        # Even tile count, rebalanced sizes: v7x's 2 TensorCores split the
        # "parallel" row axis evenly (negligible cost on single-core v5e/v6e).
        n_tiles = max(2, n_tiles)
        if n_tiles % 2:
            n_tiles += 1
        t_r = pl.cdiv(R, n_tiles)

    vmem_limit = min(int(cap * 3 / 4),
                     max(32 * 2**20, vmem_bytes(t_r) + 16 * 2**20))
    return t_r, n_tiles, int(vmem_limit)


# ------------------------------ forward (NHWC) ------------------------------ #

def up_conv_forward_nhwc(x_nhwc, weight, bias, *, compute_dtype=jnp.bfloat16,
                         out_dtype=None, interpret=False):
    """ConvTranspose2d(C_in, C_out, k=2, s=2) on NHWC input; returns NHWC.

    compute_dtype: dtype for x / w feeding the MXU (accumulation is f32 either
                   way).  Default bf16 = native MXU dtype, halves HBM reads.
                   Pass jnp.float32 (or None -> x.dtype) for exact f32.
    out_dtype:     stored output dtype; defaults to compute_dtype (halves the
                   dominant HBM write stream when bf16).
    """
    N, H, W, C_in = x_nhwc.shape
    C_out = weight.shape[1]
    K2, K4 = 2 * C_out, 4 * C_out

    cd = jnp.dtype(compute_dtype) if compute_dtype is not None else x_nhwc.dtype
    od = jnp.dtype(out_dtype) if out_dtype is not None else cd

    # Weight (C_in, C_out, kh, kw) -> (C_in, 4*C_out), columns (kh, kw, co).
    w_r = jnp.transpose(weight, (0, 2, 3, 1)).reshape(C_in, K4).astype(cd)
    # Bias -> (1, 4*C_out) in the same column order; kept f32 for the accumulator.
    b_r = jnp.tile(bias, 4).reshape(1, K4).astype(jnp.float32)

    # Group pixels by image row: (N*H, W, C_in).
    R = N * H
    x3 = x_nhwc.astype(cd).reshape(R, W, C_in)

    t_r, n_tiles, vmem_limit = _choose_row_tiling(
        R, W, C_in, C_out, jnp.dtype(cd).itemsize, jnp.dtype(od).itemsize)
    R_pad = n_tiles * t_r
    if R_pad != R:
        x3 = jnp.pad(x3, ((0, R_pad - R), (0, 0), (0, 0)))

    flops = 2 * R_pad * W * C_in * K4
    bytes_accessed = int(x3.size * x3.dtype.itemsize
                         + w_r.size * w_r.dtype.itemsize
                         + b_r.size * b_r.dtype.itemsize
                         + R_pad * 2 * W * K2 * jnp.dtype(od).itemsize)

    y4 = pl.pallas_call(
        _upconv_kernel,
        out_shape=jax.ShapeDtypeStruct((R_pad, 2, W, K2), od),
        grid_spec=pltpu.PrefetchScalarGridSpec(
            num_scalar_prefetch=0,
            grid=(n_tiles,),
            in_specs=[
                pl.BlockSpec((t_r, W, C_in), lambda i: (i, 0, 0)),   # x rows
                pl.BlockSpec((C_in, K4), lambda i: (0, 0)),          # weights (grid-constant)
                pl.BlockSpec((1, K4), lambda i: (0, 0)),             # bias (grid-constant)
            ],
            out_specs=pl.BlockSpec((t_r, 2, W, K2), lambda i: (i, 0, 0, 0)),
        ),
        compiler_params=pltpu.CompilerParams(
            dimension_semantics=("parallel",),
            vmem_limit_bytes=vmem_limit,
        ),
        cost_estimate=pl.CostEstimate(
            flops=flops, transcendentals=0, bytes_accessed=bytes_accessed),
        interpret=interpret,
    )(x3, w_r, b_r)

    if R_pad != R:
        y4 = y4[:R]
    # (N*H, kh, W, kw*C_out) -> (N, 2H, 2W, C_out): pure reshape, no transpose.
    return y4.reshape(N, 2 * H, 2 * W, C_out)


# ------------------------------ forward (NCHW) ------------------------------ #

def up_conv_forward(x_nchw, weight, bias, **kwargs):
    """
    x_nchw : (N, C_in, H, W)        -- PyTorch NCHW input
    weight : (C_in, C_out, 2, 2)    -- PyTorch ConvTranspose2d weight layout
    bias   : (C_out,)
    returns: (N, C_out, 2H, 2W)     -- NCHW, matching the PyTorch module
    """
    # Interface-only layout glue; keep activations NHWC across a full U-Net
    # (use up_conv_forward_nhwc directly) to avoid the output transpose pass.
    x_nhwc = jnp.transpose(x_nchw, (0, 2, 3, 1))
    y_nhwc = up_conv_forward_nhwc(x_nhwc, weight, bias, **kwargs)
    return jnp.transpose(y_nhwc, (0, 3, 1, 2))


# ------------------------------- reference ---------------------------------- #

def up_conv_reference(x_nchw, weight, bias):
    # out[n, co, 2h+kh, 2w+kw] = sum_ci x[n,ci,h,w]*W[ci,co,kh,kw] + b[co]
    y = jnp.einsum('nihw,iokl->nohwkl', x_nchw, weight)
    N, C_out, H, W, _, _ = y.shape
    y = jnp.transpose(y, (0, 1, 2, 4, 3, 5)).reshape(N, C_out, 2 * H, 2 * W)
    return y + bias[None, :, None, None]


# ---------------------------------- main ------------------------------------ #

if __name__ == "__main__":
    def make(key, N, C_in, C_out, H, W):
        kx, kw, kb = jax.random.split(key, 3)
        x = jax.random.normal(kx, (N, C_in, H, W), dtype=jnp.float32)
        w = jax.random.normal(kw, (C_in, C_out, 2, 2), dtype=jnp.float32) * 0.1
        b = jax.random.normal(kb, (C_out,), dtype=jnp.float32) * 0.1
        return x, w, b

    key = jax.random.PRNGKey(0)
    k1, k2 = jax.random.split(key)

    f32_fwd = jax.jit(functools.partial(up_conv_forward, compute_dtype=jnp.float32))
    bf16_fwd = jax.jit(up_conv_forward)   # default perf path: bf16 in / bf16 out

    # 1) primary shape (N, C_in, H, W) = (2, 4, 16, 16), C_out = 8 -- exact f32.
    x, w, b = make(k1, 2, 4, 8, 16, 16)
    out = jax.block_until_ready(f32_fwd(x, w, b))
    ref = up_conv_reference(x, w, b)
    assert out.shape == (2, 8, 32, 32), out.shape
    assert jnp.allclose(out, ref, atol=1e-5, rtol=1e-5), "f32 mismatch vs reference"

    #    default bf16 compute + bf16 output path: sanity check, loose tolerance.
    out_bf16 = jax.block_until_ready(bf16_fwd(x, w, b))
    assert out_bf16.dtype == jnp.bfloat16, out_bf16.dtype
    assert jnp.allclose(out_bf16.astype(jnp.float32), ref, atol=5e-2, rtol=5e-2), \
        "bf16 mismatch vs reference"

    # 2) odd spatial width (W % 8 != 0), padded/rebalanced row grid, small C_out.
    x2_, w2_, b2_ = make(k2, 3, 8, 4, 7, 12)
    out2 = jax.block_until_ready(f32_fwd(x2_, w2_, b2_))
    ref2 = up_conv_reference(x2_, w2_, b2_)
    assert out2.shape == (3, 4, 14, 24), out2.shape
    assert jnp.allclose(out2, ref2, atol=1e-5, rtol=1e-5), "odd-W mismatch vs reference"

    print("KERNEL_OK")
</pallas_src>

<mosaic_0001>
module attributes {stable_mosaic.version = 11 : i64} {
  func.func @_upconv_kernel(%arg0: i32, %arg1: memref<16x16x4xf32, #tpu.memory_space<vmem>>, %arg2: memref<4x32xf32, #tpu.memory_space<vmem>>, %arg3: memref<1x32xf32, #tpu.memory_space<vmem>>, %arg4: memref<16x2x16x16xf32, #tpu.memory_space<vmem>>) attributes {dimension_semantics = [#tpu.dimension_semantics<parallel>], iteration_bounds = array<i64: 2>, scalar_prefetch = 0 : i64, scratch_operands = 0 : i64, tpu.core_type = #tpu.core_type<tc>, window_params = [{transform_indices = @transform_0, window_bounds = array<i64: 16, 16, 4>}, {pipeline_mode = #tpu.pipeline_mode<synchronous>, transform_indices = @transform_1, window_bounds = array<i64: 4, 32>}, {pipeline_mode = #tpu.pipeline_mode<synchronous>, transform_indices = @transform_2, window_bounds = array<i64: 1, 32>}, {transform_indices = @transform_3, window_bounds = array<i64: 16, 2, 16, 16>}]} {
    %c0 = arith.constant 0 : index
    %c0_0 = arith.constant 0 : index
    %c0_1 = arith.constant 0 : index
    %0 = vector.load %arg1[%c0, %c0_0, %c0_1] : memref<16x16x4xf32, #tpu.memory_space<vmem>>, vector<16x16x4xf32>
    %1 = vector.shape_cast %0 : vector<16x16x4xf32> to vector<256x4xf32>
    %c0_2 = arith.constant 0 : index
    %c0_3 = arith.constant 0 : index
    %2 = vector.load %arg2[%c0_2, %c0_3] : memref<4x32xf32, #tpu.memory_space<vmem>>, vector<4x32xf32>
    %cst = arith.constant dense<0.000000e+00> : vector<256x32xf32>
    %3 = tpu.matmul %1, %2, %cst {dimension_numbers = #tpu.dot_dimension_numbers<[1], [0], [0], [1], [0, 0, 1, 1], [], []>} : vector<256x4xf32>, vector<4x32xf32>, vector<256x32xf32> -> vector<256x32xf32>
    %c0_4 = arith.constant 0 : index
    %c0_5 = arith.constant 0 : index
    %4 = vector.load %arg3[%c0_4, %c0_5] : memref<1x32xf32, #tpu.memory_space<vmem>>, vector<1x32xf32>
    %5 = vector.broadcast %4 : vector<1x32xf32> to vector<256x32xf32>
    %6 = arith.addf %3, %5 : vector<256x32xf32>
    %7 = vector.shape_cast %6 : vector<256x32xf32> to vector<16x16x32xf32>
    %8 = vector.extract_strided_slice %7 {offsets = [0, 0, 0], sizes = [16, 16, 16], strides = [1, 1, 1]} : vector<16x16x32xf32> to vector<16x16x16xf32>
    %c0_6 = arith.constant 0 : index
    %c0_7 = arith.constant 0 : index
    %c0_8 = arith.constant 0 : index
    %c0_9 = arith.constant 0 : index
    %9 = vector.load %arg4[%c0_6, %c0_7, %c0_8, %c0_9] : memref<16x2x16x16xf32, #tpu.memory_space<vmem>>, vector<16x1x16x16xf32>
    %10 = vector.shape_cast %9 : vector<16x1x16x16xf32> to vector<16x16x16xf32>
    %11 = vector.shape_cast %8 : vector<16x16x16xf32> to vector<16x1x16x16xf32>
    tpu.vector_store %arg4[%c0_6, %c0_7, %c0_8, %c0_9], %11 {strides = array<i32>} : memref<16x2x16x16xf32, #tpu.memory_space<vmem>>, vector<16x1x16x16xf32>,
    %12 = vector.extract_strided_slice %7 {offsets = [0, 0, 16], sizes = [16, 16, 16], strides = [1, 1, 1]} : vector<16x16x32xf32> to vector<16x16x16xf32>
    %c0_10 = arith.constant 0 : index
    %c1 = arith.constant 1 : index
    %c0_11 = arith.constant 0 : index
    %c0_12 = arith.constant 0 : index
    %13 = vector.load %arg4[%c0_10, %c1, %c0_11, %c0_12] : memref<16x2x16x16xf32, #tpu.memory_space<vmem>>, vector<16x1x16x16xf32>
    %14 = vector.shape_cast %13 : vector<16x1x16x16xf32> to vector<16x16x16xf32>
    %15 = vector.shape_cast %12 : vector<16x16x16xf32> to vector<16x1x16x16xf32>
    tpu.vector_store %arg4[%c0_10, %c1, %c0_11, %c0_12], %15 {strides = array<i32>} : memref<16x2x16x16xf32, #tpu.memory_space<vmem>>, vector<16x1x16x16xf32>,
    return
  }
  func.func @transform_0(%arg0: i32) -> (i32, i32, i32) {
    %c0_i32 = arith.constant 0 : i32
    %c0_i32_0 = arith.constant 0 : i32
    %c0_i32_1 = arith.constant 0 : i32
    return %arg0, %c0_i32, %c0_i32_0 : i32, i32, i32
  }
  func.func @transform_1(%arg0: i32) -> (i32, i32) {
    %c0_i32 = arith.constant 0 : i32
    %c0_i32_0 = arith.constant 0 : i32
    %c0_i32_1 = arith.constant 0 : i32
    return %c0_i32, %c0_i32_0 : i32, i32
  }
  func.func @transform_2(%arg0: i32) -> (i32, i32) {
    %c0_i32 = arith.constant 0 : i32
    %c0_i32_0 = arith.constant 0 : i32
    %c0_i32_1 = arith.constant 0 : i32
    return %c0_i32, %c0_i32_0 : i32, i32
  }
  func.func @transform_3(%arg0: i32) -> (i32, i32, i32, i32) {
    %c0_i32 = arith.constant 0 : i32
    %c0_i32_0 = arith.constant 0 : i32
    %c0_i32_1 = arith.constant 0 : i32
    %c0_i32_2 = arith.constant 0 : i32
    return %arg0, %c0_i32, %c0_i32_0, %c0_i32_1 : i32, i32, i32, i32
  }
}

</mosaic_0001>

<bundles_post_ra>
// kernel: tile.8
= control target key start
LH: loop header
LB: loop body
LE: loop exit
PB: predicated region body
PF: predicated region fallthrough
CT: control target
= control target key end

     0   :  { %s22_s0 = inlined_call_operand.vmem [shape: f32[8], index: 0, kind: input, shape index: {}]   ;;  %s23_s1 = inlined_call_operand.vmem [shape: f32[4,8], index: 1, kind: output, shape index: {}]  }
   0x1   :  { %v4_v0 = vld [vmem:[%s22_s0] ss:$0 sm:$0xff] }
   0x2   :  { %5 = vst [vmem:[%s23_s1] sm:$0xf] %v4_v0 }

// kernel: tile.9
= control target key start
LH: loop header
LB: loop body
LE: loop exit
PB: predicated region body
PF: predicated region fallthrough
CT: control target
= control target key end

     0   :  { %vm7_vm0 = vcmask 64512   ;;  %s37_s8 = smov 8   ;;  %s38_s9 = smov 16   ;;  %vm13_vm1 = vcmask 261312   ;;  %vm19_vm2 = vcmask 195712   ;;  %vm25_vm3 = vcmask 130112   ;;  %s55_s0 = inlined_call_operand.vmem [shape: f32[4,8], index: 0, kind: input, shape index: {}]   ;;  %s56_s1 = inlined_call_operand.vmem [shape: f32[1,32], index: 1, kind: output, shape index: {}]  }
   0x1   :  { %v4_v0 = vld [vmem:[%s55_s0] sm:$0xf]  ;;  %s36_s0 = smov 24  }
   0x2   :  { %5 = vst [vmem:[#allocation1] sm:$0xf] %v4_v0 }
   0x9   :  { %v10_v1 = vld [vmem:[#allocation1 + $0x3] sm:$0x1]   ;;  %v22_v2 = vld [vmem:[#allocation1 + $0x1] sm:$0x1]   ;;  %v6_v3 = vld [vmem:[#allocation1] sm:$0x1]  }
   0xa   :  { %11 = vrot.lane.b32.xlu0 %v10_v1, %s36_s0  ;;  %23 = vrot.lane.b32.xlu1 %v22_v2, %s37_s8  ;;  %v16_v4 = vld [vmem:[#allocation1 + $0x2] sm:$0x1]   ;;  %8 = vst.msk [vmem:[#allocation0] sm:$0x1] %vm7_vm0, %v6_v3  }
   0xe   :  { %17 = vrot.lane.b32.xlu0 %v16_v4, %s38_s9 }
  0x7c   :  { %v12_v5 = vpop.permute.xlu0 %11   ;;  %v24_v6 = vpop.permute.xlu1 %23  }
  0x7d   :  { %14 = vst.msk [vmem:[#allocation0] sm:$0x1] %vm13_vm1, %v12_v5  }
  0x80   :  { %v18_v7 = vpop.permute.xlu0 %17  }
  0x81   :  { %20 = vst.msk [vmem:[#allocation0] sm:$0x1] %vm19_vm2, %v18_v7  }
  0x82   :  { %26 = vst.msk [vmem:[#allocation0] sm:$0x1] %vm25_vm3, %v24_v6  }
  0x89   :  { %v30_v8 = vld [vmem:[#allocation0] sm:$0x1] }
  0x8a   :  { %32 = vst [vmem:[%s56_s1] sm:$0x1] %v30_v8 }

// kernel: up_conv_forward.1
= control target key start
LH: loop header
LB: loop body
LE: loop exit
PB: predicated region body
PF: predicated region fallthrough
CT: control target
= control target key end

     0   :  { %s1001_s12 = smov 0   ;;  %s1290_s0 = inlined_call_operand.vmem [shape: f32[32,16,4], index: 0, kind: input, shape index: {}]   ;;  %s1291_s1 = inlined_call_operand.vmem [shape: f32[4,32], index: 1, kind: input, shape index: {}]   ;;  %s1292_s2 = inlined_call_operand.vmem [shape: f32[1,32], index: 2, kind: input, shape index: {}]   ;;  %s1293_s3 = inlined_call_operand.vmem [shape: f32[32,2,16,16], index: 3, kind: output, shape index: {}]  }
   0x1 LB: > { %s797_s13 = sadd.s32 4294967295, %s978_s12   ;;  %p801_p0 = scmp.ge.s32.totalorder %s978_s12, 1  ;;  %s978_s12 = sphi %s1001_s12, %s13_s12  }
   0x2   : > { %p139_p1 = scmp.lt.s32.totalorder %s978_s12, 3 }
   0x4   : > { %p140_p2 = pnand %p801_p0, %p139_p1 }
   0x5   : > { %v211_v0 = vld [vmem:[%s1291_s1] sm:$0xf] (!%p140_p2)  ;;  %vm316_vm0 = vcmask (!%p140_p2), 1043456   ;;  %s802_s16 = sshll.u32 (!%p140_p2), %s797_s13, 4  ;;  %vm219_vm1 = vcmask (!%p140_p2), 31744   ;;  %vm545_vm2 = vcmask (!%p140_p2), 130048  }
   0x6   : > { %143 = sbr.rel (%p140_p2) target bundleno = 409 (0x199), region = 32  ;;  %911 = vmatprep.subr.msk.mxu0 (!%p140_p2), %vm316_vm0, %v211_v0  ;;  %961 = vmatprep.subr.msk.mxu1 (!%p140_p2), %vm316_vm0, %v211_v0  ;;  %p166_p3 = scmp.lt.s32.totalorder (!%p140_p2), %s802_s16, 31  ;;  %v1088_v33 = vld [vmem:[%s1292_s2] ss:$0 sm:$0xff] (!%p140_p2) }
   0x7   : > { %912 = vmatpush3.msk.msra.mxu0 (!%p140_p2), %vm316_vm0, %v211_v0  ;;  %962 = vmatpush3.msk.msra.mxu1 (!%p140_p2), %vm316_vm0, %v211_v0  ;;  %s980_s27 = smov (!%p140_p2), 112  }
   0xd   : > { %s1295_s16 = smov (!%p166_p3, %s802_s16), 31 }
   0xe   : > { %s876_s17 = sshll.u32 %s1295_s16, 4  ;;  %s877_s21 = sshll.u32 %s1295_s16, 5 }
   0xf   : > { %s1018_s20 = scalar_lea.vmem %s1290_s0, %s876_s17  ;;  %s1093_s26 = scalar_lea.vmem %s1293_s3, %s877_s21 }
  0x10   : > { %v179_v1 = vld [vmem:[%s1018_s20] sm:$0xff]  ;;  %v180_v3 = vld [vmem:[%s1018_s20 + $0x8] sm:$0xff]  ;;  %v181_v5 = vld [vmem:[%s1018_s20 + $0x10] sm:$0xff] }
  0x11   : > { %v195_v2 = vld [vmem:[%s1018_s20 + $0x80] sm:$0xff]  ;;  %913 = vmatprep.mubr.msk.f32.mxu0 %vm219_vm1, %v179_v1  ;;  %v196_v4 = vld [vmem:[%s1018_s20 + $0x88] sm:$0xff]  ;;  %v197_v6 = vld [vmem:[%s1018_s20 + $0x90] sm:$0xff] }
  0x12   : > { %937 = vmatprep.mubr.msk.f32.mxu1 %vm219_vm1, %v195_v2  ;;  %914 = vmatmul.mubr.msk.f32.vlgmr.msra.gmra.mrb[0].mxu0 %vm219_vm1, %v180_v3  ;;  %v182_v7 = vld [vmem:[%s1018_s20 + $0x18] sm:$0xff]  ;;  %v183_v9 = vld [vmem:[%s1018_s20 + $0x20] sm:$0xff]  ;;  %v184_v11 = vld [vmem:[%s1018_s20 + $0x28] sm:$0xff] }
  0x13   : > { %938 = vmatmul.mubr.msk.f32.vlgmr.msra.gmra.mrb[0].mxu1 %vm219_vm1, %v196_v4  ;;  %916 = vmatprep.mubr.msk.f32.mxu0 %vm219_vm1, %v181_v5  ;;  %v198_v8 = vld [vmem:[%s1018_s20 + $0x98] sm:$0xff]  ;;  %v199_v10 = vld [vmem:[%s1018_s20 + $0xa0] sm:$0xff]  ;;  %v200_v12 = vld [vmem:[%s1018_s20 + $0xa8] sm:$0xff] }
  0x14   : > { %940 = vmatprep.mubr.msk.f32.mxu1 %vm219_vm1, %v197_v6  ;;  %v185_v13 = vld [vmem:[%s1018_s20 + $0x30] sm:$0xff]  ;;  %v186_v15 = vld [vmem:[%s1018_s20 + $0x38] sm:$0xff]  ;;  %v187_v17 = vld [vmem:[%s1018_s20 + $0x40] sm:$0xff] }
  0x15   : > { %v201_v14 = vld [vmem:[%s1018_s20 + $0xb0] sm:$0xff]  ;;  %v202_v16 = vld [vmem:[%s1018_s20 + $0xb8] sm:$0xff]  ;;  %v203_v18 = vld [vmem:[%s1018_s20 + $0xc0] sm:$0xff] }
  0x16   : > { %917 = vmatmul.mubr.msk.f32.gmra.mrb[2].mxu0 %vm219_vm1, %v182_v7  ;;  %v188_v19 = vld [vmem:[%s1018_s20 + $0x48] sm:$0xff]  ;;  %v189_v21 = vld [vmem:[%s1018_s20 + $0x50] sm:$0xff]  ;;  %v190_v23 = vld [vmem:[%s1018_s20 + $0x58] sm:$0xff] }
  0x17   : > { %941 = vmatmul.mubr.msk.f32.gmra.mrb[2].mxu1 %vm219_vm1, %v198_v8  ;;  %919 = vmatprep.mubr.msk.f32.mxu0 %vm219_vm1, %v183_v9  ;;  %v204_v20 = vld [vmem:[%s1018_s20 + $0xc8] sm:$0xff]  ;;  %v205_v22 = vld [vmem:[%s1018_s20 + $0xd0] sm:$0xff]  ;;  %v206_v24 = vld [vmem:[%s1018_s20 + $0xd8] sm:$0xff] }
  0x18   : > { %943 = vmatprep.mubr.msk.f32.mxu1 %vm219_vm1, %v199_v10  ;;  %v191_v25 = vld [vmem:[%s1018_s20 + $0x60] sm:$0xff]  ;;  %v192_v27 = vld [vmem:[%s1018_s20 + $0x68] sm:$0xff]  ;;  %v193_v29 = vld [vmem:[%s1018_s20 + $0x70] sm:$0xff] }
  0x19   : > { %v207_v26 = vld [vmem:[%s1018_s20 + $0xe0] sm:$0xff]  ;;  %v208_v28 = vld [vmem:[%s1018_s20 + $0xe8] sm:$0xff]  ;;  %v209_v30 = vld [vmem:[%s1018_s20 + $0xf0] sm:$0xff] }
  0x1a   : > { %920 = vmatmul.mubr.msk.f32.gmra.mrb[4].mxu0 %vm219_vm1, %v184_v11  ;;  %v194_v31 = vld [vmem:[%s1018_s20 + $0x78] sm:$0xff] }
  0x1b   : > { %944 = vmatmul.mubr.msk.f32.gmra.mrb[4].mxu1 %vm219_vm1, %v200_v12  ;;  %922 = vmatprep.mubr.msk.f32.mxu0 %vm219_vm1, %v185_v13  ;;  %v210_v32 = vld [vmem:[%s1018_s20 + $0xf8] sm:$0xff] }
  0x1c   : > { %946 = vmatprep.mubr.msk.f32.mxu1 %vm219_vm1, %v201_v14 }
  0x1e   : > { %923 = vmatmul.mubr.msk.f32.gmra.mrb[6].mxu0 %vm219_vm1, %v186_v15 }
  0x1f   : > { %947 = vmatmul.mubr.msk.f32.gmra.mrb[6].mxu1 %vm219_vm1, %v202_v16  ;;  %925 = vmatprep.mubr.msk.f32.mxu0 %vm219_vm1, %v187_v17 }
  0x20   : > { %949 = vmatprep.mubr.msk.f32.mxu1 %vm219_vm1, %v203_v18 }
  0x22   : > { %926 = vmatmul.mubr.msk.f32.gmra.mrb[8].mxu0 %vm219_vm1, %v188_v19 }
  0x23   : > { %950 = vmatmul.mubr.msk.f32.gmra.mrb[8].mxu1 %vm219_vm1, %v204_v20  ;;  %928 = vmatprep.mubr.msk.f32.mxu0 %vm219_vm1, %v189_v21 }
  0x24   : > { %952 = vmatprep.mubr.msk.f32.mxu1 %vm219_vm1, %v205_v22 }
  0x26   : > { %929 = vmatmul.mubr.msk.f32.gmra.mrb[10].mxu0 %vm219_vm1, %v190_v23 }
  0x27   : > { %953 = vmatmul.mubr.msk.f32.gmra.mrb[10].mxu1 %vm219_vm1, %v206_v24  ;;  %931 = vmatprep.mubr.msk.f32.mxu0 %vm219_vm1, %v191_v25 }
  0x28   : > { %955 = vmatprep.mubr.msk.f32.mxu1 %vm219_vm1, %v207_v26 }
  0x2a   : > { %932 = vmatmul.mubr.msk.f32.gmra.mrb[12].mxu0 %vm219_vm1, %v192_v27 }
  0x2b   : > { %956 = vmatmul.mubr.msk.f32.gmra.mrb[12].mxu1 %vm219_vm1, %v208_v28  ;;  %934 = vmatprep.mubr.msk.f32.mxu0 %vm219_vm1, %v193_v29 }
  0x2c   : > { %958 = vmatprep.mubr.msk.f32.mxu1 %vm219_vm1, %v209_v30 }
  0x2e   : > { %935 = vmatmul.mubr.msk.f32.gmra.mrb[14].mxu0 %vm219_vm1, %v194_v31 }
  0x2f   : > { %959 = vmatmul.mubr.msk.f32.gmra.mrb[14].mxu1 %vm219_vm1, %v210_v32 }
  0xe5   : > { %v915_v34 = vpop.f32.mrb[0].mxu0 }
  0xe6   : > { %v939_v35 = vpop.f32.mrb[0].mxu1  ;;  %v392_v36 = vadd.f32 %v915_v34, %v1088_v33  ;;  %v386_v38 = vpop.f32.mrb[1].mxu0 }
  0xe7   : > { %v472_v37 = vadd.f32 %v939_v35, %v1088_v33  ;;  %v466_v39 = vpop.f32.mrb[1].mxu1  ;;  %v387_v40 = vadd.f32 %v1088_v33, %v386_v38 }
  0xe8   : > { %v467_v41 = vadd.f32 %v1088_v33, %v466_v39  ;;  %547 = vst.msk [vmem:[%s1093_s26 + $0x8] sm:$0xff] %vm545_vm2, %v392_v36  ;;  %612 = vrot.lane.b32.xlu0 %v392_v36, %s980_s27 }
  0xe9   : > { %563 = vst.msk [vmem:[%s1093_s26 + $0x108] sm:$0xff] %vm545_vm2, %v472_v37  ;;  %644 = vrot.lane.b32.xlu1 %v472_v37, %s980_s27  ;;  %546 = vst.msk [vmem:[%s1093_s26] sm:$0xff] %vm545_vm2, %v387_v40  ;;  %v918_v42 = vpop.f32.mrb[2].mxu0 }
  0xea   : > { %562 = vst.msk [vmem:[%s1093_s26 + $0x100] sm:$0xff] %vm545_vm2, %v467_v41  ;;  %v942_v43 = vpop.f32.mrb[2].mxu1  ;;  %v402_v44 = vadd.f32 %v918_v42, %v1088_v33  ;;  %v396_v45 = vpop.f32.mrb[3].mxu0 }
  0xeb   : > { %v482_v46 = vadd.f32 %v942_v43, %v1088_v33  ;;  %v476_v47 = vpop.f32.mrb[3].mxu1  ;;  %v397_v48 = vadd.f32 %v1088_v33, %v396_v45 }
  0xec   : > { %v477_v49 = vadd.f32 %v1088_v33, %v476_v47  ;;  %549 = vst.msk [vmem:[%s1093_s26 + $0x28] sm:$0xff] %vm545_vm2, %v402_v44  ;;  %610 = vrot.lane.b32.xlu0 %v387_v40, %s980_s27 }
  0xed   : > { %565 = vst.msk [vmem:[%s1093_s26 + $0x128] sm:$0xff] %vm545_vm2, %v482_v46  ;;  %616 = vrot.lane.b32.xlu1 %v402_v44, %s980_s27  ;;  %548 = vst.msk [vmem:[%s1093_s26 + $0x20] sm:$0xff] %vm545_vm2, %v397_v48  ;;  %v921_v50 = vpop.f32.mrb[4].mxu0 }
  0xee   : > { %564 = vst.msk [vmem:[%s1093_s26 + $0x120] sm:$0xff] %vm545_vm2, %v477_v49  ;;  %v945_v51 = vpop.f32.mrb[4].mxu1  ;;  %v412_v52 = vadd.f32 %v921_v50, %v1088_v33  ;;  %v406_v53 = vpop.f32.mrb[5].mxu0 }
  0xef   : > { %v492_v54 = vadd.f32 %v945_v51, %v1088_v33  ;;  %v486_v55 = vpop.f32.mrb[5].mxu1  ;;  %v407_v56 = vadd.f32 %v1088_v33, %v406_v53 }
  0xf0   : > { %v487_v57 = vadd.f32 %v1088_v33, %v486_v55  ;;  %642 = vrot.lane.b32.xlu0 %v467_v41, %s980_s27  ;;  %551 = vst.msk [vmem:[%s1093_s26 + $0x48] sm:$0xff] %vm545_vm2, %v412_v52 }
  0xf1   : > { %648 = vrot.lane.b32.xlu1 %v482_v46, %s980_s27  ;;  %567 = vst.msk [vmem:[%s1093_s26 + $0x148] sm:$0xff] %vm545_vm2, %v492_v54  ;;  %550 = vst.msk [vmem:[%s1093_s26 + $0x40] sm:$0xff] %vm545_vm2, %v407_v56  ;;  %v924_v58 = vpop.f32.mrb[6].mxu0 }
  0xf2   : > { %566 = vst.msk [vmem:[%s1093_s26 + $0x140] sm:$0xff] %vm545_vm2, %v487_v57  ;;  %v948_v59 = vpop.f32.mrb[6].mxu1  ;;  %v422_v60 = vadd.f32 %v924_v58, %v1088_v33  ;;  %v416_v61 = vpop.f32.mrb[7].mxu0 }
  0xf3   : > { %v502_v62 = vadd.f32 %v948_v59, %v1088_v33  ;;  %v496_v63 = vpop.f32.mrb[7].mxu1  ;;  %v417_v0 = vadd.f32 %v1088_v33, %v416_v61 }
  0xf4   : > { %v497_v1 = vadd.f32 %v1088_v33, %v496_v63  ;;  %646 = vrot.lane.b32.xlu0 %v477_v49, %s980_s27  ;;  %553 = vst.msk [vmem:[%s1093_s26 + $0x68] sm:$0xff] %vm545_vm2, %v422_v60 }
  0xf5   : > { %614 = vrot.lane.b32.xlu1 %v397_v48, %s980_s27  ;;  %569 = vst.msk [vmem:[%s1093_s26 + $0x168] sm:$0xff] %vm545_vm2, %v502_v62  ;;  %552 = vst.msk [vmem:[%s1093_s26 + $0x60] sm:$0xff] %vm545_vm2, %v417_v0  ;;  %v927_v2 = vpop.f32.mrb[8].mxu0 }
  0xf6   : > { %568 = vst.msk [vmem:[%s1093_s26 + $0x160] sm:$0xff] %vm545_vm2, %v497_v1  ;;  %v951_v3 = vpop.f32.mrb[8].mxu1  ;;  %v432_v4 = vadd.f32 %v927_v2, %v1088_v33  ;;  %v426_v5 = vpop.f32.mrb[9].mxu0 }
  0xf7   : > { %v512_v6 = vadd.f32 %v951_v3, %v1088_v33  ;;  %v506_v7 = vpop.f32.mrb[9].mxu1  ;;  %v427_v8 = vadd.f32 %v1088_v33, %v426_v5 }
  0xf8   : > { %v507_v9 = vadd.f32 %v1088_v33, %v506_v7  ;;  %618 = vrot.lane.b32.xlu0 %v407_v56, %s980_s27  ;;  %555 = vst.msk [vmem:[%s1093_s26 + $0x88] sm:$0xff] %vm545_vm2, %v432_v4 }
  0xf9   : > { %620 = vrot.lane.b32.xlu1 %v412_v52, %s980_s27  ;;  %571 = vst.msk [vmem:[%s1093_s26 + $0x188] sm:$0xff] %vm545_vm2, %v512_v6  ;;  %554 = vst.msk [vmem:[%s1093_s26 + $0x80] sm:$0xff] %vm545_vm2, %v427_v8  ;;  %v930_v10 = vpop.f32.mrb[10].mxu0 }
  0xfa   : > { %570 = vst.msk [vmem:[%s1093_s26 + $0x180] sm:$0xff] %vm545_vm2, %v507_v9  ;;  %v954_v11 = vpop.f32.mrb[10].mxu1  ;;  %v442_v12 = vadd.f32 %v930_v10, %v1088_v33  ;;  %v436_v13 = vpop.f32.mrb[11].mxu0 }
  0xfb   : > { %v522_v14 = vadd.f32 %v954_v11, %v1088_v33  ;;  %v516_v15 = vpop.f32.mrb[11].mxu1  ;;  %v437_v16 = vadd.f32 %v1088_v33, %v436_v13 }
  0xfc   : > { %v517_v17 = vadd.f32 %v1088_v33, %v516_v15  ;;  %650 = vrot.lane.b32.xlu0 %v487_v57, %s980_s27  ;;  %557 = vst.msk [vmem:[%s1093_s26 + $0xa8] sm:$0xff] %vm545_vm2, %v442_v12 }
  0xfd   : > { %652 = vrot.lane.b32.xlu1 %v492_v54, %s980_s27  ;;  %573 = vst.msk [vmem:[%s1093_s26 + $0x1a8] sm:$0xff] %vm545_vm2, %v522_v14  ;;  %556 = vst.msk [vmem:[%s1093_s26 + $0xa0] sm:$0xff] %vm545_vm2, %v437_v16  ;;  %v933_v18 = vpop.f32.mrb[12].mxu0 }
  0xfe   : > { %572 = vst.msk [vmem:[%s1093_s26 + $0x1a0] sm:$0xff] %vm545_vm2, %v517_v17  ;;  %v957_v19 = vpop.f32.mrb[12].mxu1  ;;  %v452_v20 = vadd.f32 %v933_v18, %v1088_v33  ;;  %v446_v21 = vpop.f32.mrb[13].mxu0 }
  0xff   : > { %v532_v22 = vadd.f32 %v957_v19, %v1088_v33  ;;  %v526_v23 = vpop.f32.mrb[13].mxu1  ;;  %v447_v24 = vadd.f32 %v1088_v33, %v446_v21 }
 0x100   : > { %v527_v25 = vadd.f32 %v1088_v33, %v526_v23  ;;  %622 = vrot.lane.b32.xlu0 %v417_v0, %s980_s27  ;;  %559 = vst.msk [vmem:[%s1093_s26 + $0xc8] sm:$0xff] %vm545_vm2, %v452_v20 }
 0x101   : > { %624 = vrot.lane.b32.xlu1 %v422_v60, %s980_s27  ;;  %575 = vst.msk [vmem:[%s1093_s26 + $0x1c8] sm:$0xff] %vm545_vm2, %v532_v22  ;;  %558 = vst.msk [vmem:[%s1093_s26 + $0xc0] sm:$0xff] %vm545_vm2, %v447_v24  ;;  %v936_v26 = vpop.f32.mrb[14].mxu0 }
 0x102   : > { %574 = vst.msk [vmem:[%s1093_s26 + $0x1c0] sm:$0xff] %vm545_vm2, %v527_v25  ;;  %v960_v27 = vpop.f32.mrb[14].mxu1  ;;  %v462_v28 = vadd.f32 %v936_v26, %v1088_v33  ;;  %v456_v29 = vpop.f32.mrb[15].mxu0 }
 0x103   : > { %v542_v30 = vadd.f32 %v960_v27, %v1088_v33  ;;  %v536_v31 = vpop.f32.mrb[15].mxu1  ;;  %v457_v32 = vadd.f32 %v1088_v33, %v456_v29 }
 0x104   : > { %v537_v34 = vadd.f32 %v1088_v33, %v536_v31  ;;  %654 = vrot.lane.b32.xlu0 %v497_v1, %s980_s27  ;;  %561 = vst.msk [vmem:[%s1093_s26 + $0xe8] sm:$0xff] %vm545_vm2, %v462_v28 }
 0x105   : > { %656 = vrot.lane.b32.xlu1 %v502_v62, %s980_s27  ;;  %577 = vst.msk [vmem:[%s1093_s26 + $0x1e8] sm:$0xff] %vm545_vm2, %v542_v30  ;;  %560 = vst.msk [vmem:[%s1093_s26 + $0xe0] sm:$0xff] %vm545_vm2, %v457_v32 }
 0x106   : > { %576 = vst.msk [vmem:[%s1093_s26 + $0x1e0] sm:$0xff] %vm545_vm2, %v537_v34 }
 0x108   : > { %626 = vrot.lane.b32.xlu0 %v427_v8, %s980_s27 }
 0x109   : > { %628 = vrot.lane.b32.xlu1 %v432_v4, %s980_s27 }
 0x10c   : > { %658 = vrot.lane.b32.xlu0 %v507_v9, %s980_s27 }
 0x10d   : > { %660 = vrot.lane.b32.xlu1 %v512_v6, %s980_s27 }
 0x110   : > { %630 = vrot.lane.b32.xlu0 %v437_v16, %s980_s27 }
 0x111   : > { %632 = vrot.lane.b32.xlu1 %v442_v12, %s980_s27 }
 0x114   : > { %662 = vrot.lane.b32.xlu0 %v517_v17, %s980_s27 }
 0x115   : > { %664 = vrot.lane.b32.xlu1 %v522_v14, %s980_s27 }
 0x118   : > { %634 = vrot.lane.b32.xlu0 %v447_v24, %s980_s27 }
 0x119   : > { %636 = vrot.lane.b32.xlu1 %v452_v20, %s980_s27 }
 0x11c   : > { %666 = vrot.lane.b32.xlu0 %v527_v25, %s980_s27 }
 0x11d   : > { %668 = vrot.lane.b32.xlu1 %v532_v22, %s980_s27 }
 0x120   : > { %638 = vrot.lane.b32.xlu0 %v457_v32, %s980_s27 }
 0x121   : > { %640 = vrot.lane.b32.xlu1 %v462_v28, %s980_s27 }
 0x124   : > { %670 = vrot.lane.b32.xlu0 %v537_v34, %s980_s27 }
 0x125   : > { %672 = vrot.lane.b32.xlu1 %v542_v30, %s980_s27 }
 0x15a   : > { %v613_v35 = vpop.permute.xlu0 %612 }
 0x15b   : > { %v645_v33 = vpop.permute.xlu1 %644  ;;  %843 = vst.msk [vmem:[%s1093_s26 + $0x18] sm:$0xff] %vm545_vm2, %v613_v35 }
 0x15c   : > { %859 = vst.msk [vmem:[%s1093_s26 + $0x118] sm:$0xff] %vm545_vm2, %v645_v33 }
 0x15e   : > { %v611_v37 = vpop.permute.xlu0 %610 }
 0x15f   : > { %v617_v36 = vpop.permute.xlu1 %616  ;;  %842 = vst.msk [vmem:[%s1093_s26 + $0x10] sm:$0xff] %vm545_vm2, %v611_v37 }
 0x160   : > { %845 = vst.msk [vmem:[%s1093_s26 + $0x38] sm:$0xff] %vm545_vm2, %v617_v36 }
 0x162   : > { %v643_v39 = vpop.permute.xlu0 %642 }
 0x163   : > { %v649_v38 = vpop.permute.xlu1 %648  ;;  %858 = vst.msk [vmem:[%s1093_s26 + $0x110] sm:$0xff] %vm545_vm2, %v643_v39 }
 0x164   : > { %861 = vst.msk [vmem:[%s1093_s26 + $0x138] sm:$0xff] %vm545_vm2, %v649_v38 }
 0x166   : > { %v647_v41 = vpop.permute.xlu0 %646 }
 0x167   : > { %v615_v40 = vpop.permute.xlu1 %614  ;;  %860 = vst.msk [vmem:[%s1093_s26 + $0x130] sm:$0xff] %vm545_vm2, %v647_v41 }
 0x168   : > { %844 = vst.msk [vmem:[%s1093_s26 + $0x30] sm:$0xff] %vm545_vm2, %v615_v40 }
 0x16a   : > { %v619_v43 = vpop.permute.xlu0 %618 }
 0x16b   : > { %v621_v42 = vpop.permute.xlu1 %620  ;;  %846 = vst.msk [vmem:[%s1093_s26 + $0x50] sm:$0xff] %vm545_vm2, %v619_v43 }
 0x16c   : > { %847 = vst.msk [vmem:[%s1093_s26 + $0x58] sm:$0xff] %vm545_vm2, %v621_v42 }
 0x16e   : > { %v651_v45 = vpop.permute.xlu0 %650 }
 0x16f   : > { %v653_v44 = vpop.permute.xlu1 %652  ;;  %862 = vst.msk [vmem:[%s1093_s26 + $0x150] sm:$0xff] %vm545_vm2, %v651_v45 }
 0x170   : > { %863 = vst.msk [vmem:[%s1093_s26 + $0x158] sm:$0xff] %vm545_vm2, %v653_v44 }
 0x172   : > { %v623_v47 = vpop.permute.xlu0 %622 }
 0x173   : > { %v625_v46 = vpop.permute.xlu1 %624  ;;  %848 = vst.msk [vmem:[%s1093_s26 + $0x70] sm:$0xff] %vm545_vm2, %v623_v47 }
 0x174   : > { %849 = vst.msk [vmem:[%s1093_s26 + $0x78] sm:$0xff] %vm545_vm2, %v625_v46 }
 0x176   : > { %v655_v49 = vpop.permute.xlu0 %654 }
 0x177   : > { %v657_v48 = vpop.permute.xlu1 %656  ;;  %864 = vst.msk [vmem:[%s1093_s26 + $0x170] sm:$0xff] %vm545_vm2, %v655_v49 }
 0x178   : > { %865 = vst.msk [vmem:[%s1093_s26 + $0x178] sm:$0xff] %vm545_vm2, %v657_v48 }
 0x17a   : > { %v627_v51 = vpop.permute.xlu0 %626 }
 0x17b   : > { %v629_v50 = vpop.permute.xlu1 %628  ;;  %850 = vst.msk [vmem:[%s1093_s26 + $0x90] sm:$0xff] %vm545_vm2, %v627_v51 }
 0x17c   : > { %851 = vst.msk [vmem:[%s1093_s26 + $0x98] sm:$0xff] %vm545_vm2, %v629_v50 }
 0x17e   : > { %v659_v53 = vpop.permute.xlu0 %658 }
 0x17f   : > { %v661_v52 = vpop.permute.xlu1 %660  ;;  %866 = vst.msk [vmem:[%s1093_s26 + $0x190] sm:$0xff] %vm545_vm2, %v659_v53 }
 0x180   : > { %867 = vst.msk [vmem:[%s1093_s26 + $0x198] sm:$0xff] %vm545_vm2, %v661_v52 }
 0x182   : > { %v631_v55 = vpop.permute.xlu0 %630 }
 0x183   : > { %v633_v54 = vpop.permute.xlu1 %632  ;;  %852 = vst.msk [vmem:[%s1093_s26 + $0xb0] sm:$0xff] %vm545_vm2, %v631_v55 }
 0x184   : > { %853 = vst.msk [vmem:[%s1093_s26 + $0xb8] sm:$0xff] %vm545_vm2, %v633_v54 }
 0x186   : > { %v663_v57 = vpop.permute.xlu0 %662 }
 0x187   : > { %v665_v56 = vpop.permute.xlu1 %664  ;;  %868 = vst.msk [vmem:[%s1093_s26 + $0x1b0] sm:$0xff] %vm545_vm2, %v663_v57 }
 0x188   : > { %869 = vst.msk [vmem:[%s1093_s26 + $0x1b8] sm:$0xff] %vm545_vm2, %v665_v56 }
 0x18a   : > { %v635_v59 = vpop.permute.xlu0 %634 }
 0x18b   : > { %v637_v58 = vpop.permute.xlu1 %636  ;;  %854 = vst.msk [vmem:[%s1093_s26 + $0xd0] sm:$0xff] %vm545_vm2, %v635_v59 }
 0x18c   : > { %855 = vst.msk [vmem:[%s1093_s26 + $0xd8] sm:$0xff] %vm545_vm2, %v637_v58 }
 0x18e   : > { %v667_v61 = vpop.permute.xlu0 %666 }
 0x18f   : > { %v669_v60 = vpop.permute.xlu1 %668  ;;  %870 = vst.msk [vmem:[%s1093_s26 + $0x1d0] sm:$0xff] %vm545_vm2, %v667_v61 }
 0x190   : > { %871 = vst.msk [vmem:[%s1093_s26 + $0x1d8] sm:$0xff] %vm545_vm2, %v669_v60 }
 0x192   : > { %v639_v63 = vpop.permute.xlu0 %638 }
 0x193   : > { %v641_v62 = vpop.permute.xlu1 %640  ;;  %856 = vst.msk [vmem:[%s1093_s26 + $0xf0] sm:$0xff] %vm545_vm2, %v639_v63 }
 0x194   : > { %857 = vst.msk [vmem:[%s1093_s26 + $0xf8] sm:$0xff] %vm545_vm2, %v641_v62 }
 0x196   : > { %v671_v1 = vpop.permute.xlu0 %670 }
 0x197   : > { %v673_v0 = vpop.permute.xlu1 %672  ;;  %872 = vst.msk [vmem:[%s1093_s26 + $0x1f0] sm:$0xff] %vm545_vm2, %v671_v1 }
 0x198   : > { %873 = vst.msk [vmem:[%s1093_s26 + $0x1f8] sm:$0xff] %vm545_vm2, %v673_v0 }
 0x199 PF: > { %s13_s12 = sadd.s32 1, %s978_s12  }
 0x19a   : > { %p10_p4 = scmp.ge.s32.totalorder %s13_s12, 4  }
 0x19c   :  { %12 = sbr.rel (!%p10_p4) target bundleno = 1 (0x1), region = 63 }

</bundles_post_ra>
